<compile_context>
chip_gen: v7x
topology: tpu7x:2x2x1
jax: 0.10.0
libtpu: 0.0.40
codegen_flags: <defaults>
</compile_context>

<pallas_src>
import functools
import math

import jax
import jax.numpy as jnp
from jax.experimental import pallas as pl
from jax.experimental.pallas import tpu as pltpu

_LANE = 128
_SUBLANE = 8


def _round_up(x, m):
    return ((x + m - 1) // m) * m


def _fnn_fused_kernel(x_ref, *refs, n_in: int, num_layers: int, out_dim: int):
    """Fused forward: (Linear -> tanh) * (L-1) -> Linear, one batch tile.

    refs = (w0, b0, w1, b1, ..., w_{L-1}, b_{L-1}, out_ref).
    Weights/biases are full-array, lane-padded, VMEM-resident blocks;
    x_ref is a (tile_b, n_in) tile, out_ref a (tile_b, out_dim) tile (unpadded).
    """
    o_ref = refs[-1]
    params = refs[:-1]

    # Layer 0: contraction depth n_in (e.g. 2) is tiny -> VPU broadcast-FMAs,
    # no MXU issue for this layer.
    w0_ref, b0_ref = params[0], params[1]
    h = x_ref[:, 0:1] * w0_ref[0:1, :]
    for k in range(1, n_in):
        h = h + x_ref[:, k:k + 1] * w0_ref[k:k + 1, :]
    h = h + b0_ref[...]
    if num_layers > 1:
        h = jnp.tanh(h)

    # Remaining layers on the MXU with 128-lane-padded operands, exact f32.
    for li in range(1, num_layers):
        w_ref, b_ref = params[2 * li], params[2 * li + 1]
        h = jnp.dot(h, w_ref[...],
                    preferred_element_type=jnp.float32,
                    precision=jax.lax.Precision.HIGHEST) + b_ref[...]
        if li < num_layers - 1:
            h = jnp.tanh(h)

    # Store only the live output lanes: the output array is unpadded, so HBM
    # writeback is out_dim f32 per row instead of a 128-lane zero slab.
    o_ref[...] = h[:, :out_dim].astype(o_ref.dtype)


def init_fnn_params(key, layers):
    """Glorot-normal weights, zero biases — matches dde.maps.pytorch.FNN init."""
    params = []
    for i in range(len(layers) - 1):
        fan_in, fan_out = layers[i], layers[i + 1]
        key, sub = jax.random.split(key)
        std = math.sqrt(2.0 / (fan_in + fan_out))
        w = std * jax.random.normal(sub, (fan_in, fan_out), dtype=jnp.float32)
        b = jnp.zeros((fan_out,), dtype=jnp.float32)
        params.append((w, b))
    return params


def pad_fnn_params(params):
    """Zero-pad every layer width to a 128-lane multiple.

    Call ONCE (outside the training/eval step) so the pad graph is not rebuilt
    on every forward call.  Zero padding keeps the math exact.
    """
    n_in = params[0][0].shape[0]
    out_dim = params[-1][0].shape[1]
    padded = []
    prev = n_in
    for w, b in params:
        fan_in, fan_out = w.shape
        out_p = _round_up(fan_out, _LANE)
        w_p = (jnp.zeros((prev, out_p), jnp.float32)
               .at[:fan_in, :fan_out].set(w.astype(jnp.float32)))
        b_p = (jnp.zeros((1, out_p), jnp.float32)
               .at[0, :fan_out].set(b.astype(jnp.float32)))
        padded.append((w_p, b_p))
        prev = out_p
    return dict(padded=tuple(padded), n_in=n_in, out_dim=out_dim,
                num_layers=len(params))


def _choose_batch_tiling(batch, max_tile_b=4096):
    """Adaptive batch tiling.

    Big tiles amortize the ~0.35 us per-grid-step cost, but we keep >= 2
    (>= 4 for >=1024 rows) grid steps when the batch allows, so the "parallel"
    axis spans both v7x TensorCores and double-buffering has overlap, and we
    never pad the batch by more than one sublane group per tile.
    """
    batch_al = _round_up(batch, _SUBLANE)
    n_steps = pl.cdiv(batch_al, max_tile_b)
    if batch_al >= 1024:
        n_steps = max(n_steps, 4)
    elif batch_al >= 2 * _SUBLANE:
        n_steps = max(n_steps, 2)
    tile_b = _round_up(pl.cdiv(batch_al, n_steps), _SUBLANE)
    batch_pad = _round_up(batch, tile_b)
    return tile_b, batch_pad


def fnn_forward(x_t, packed, *, max_tile_b=4096):
    """Forward pass: tanh on hidden layers, linear output. One pallas_call."""
    padded = packed["padded"]
    n_in = packed["n_in"]
    out_dim = packed["out_dim"]
    num_layers = packed["num_layers"]

    batch = x_t.shape[0]
    assert x_t.shape[1] == n_in

    tile_b, batch_pad = _choose_batch_tiling(batch, max_tile_b)
    x_p = x_t.astype(jnp.float32)
    if batch_pad != batch:
        x_p = jnp.pad(x_p, ((0, batch_pad - batch), (0, 0)))
    grid = (batch_pad // tile_b,)

    in_specs = [pl.BlockSpec((tile_b, n_in), lambda i: (i, 0))]
    flat_params = []
    for w_p, b_p in padded:
        # Constant index_map -> block stays VMEM-resident across the whole grid.
        in_specs.append(pl.BlockSpec(w_p.shape, lambda i: (0, 0)))
        in_specs.append(pl.BlockSpec(b_p.shape, lambda i: (0, 0)))
        flat_params.extend((w_p, b_p))

    # VMEM budget: raise v5e's 16 MiB scoped default; it is only a cap, so it
    # is harmless on v6e/v7x.  Estimate stays well under 48 MiB at tile_b<=4096.
    max_width = max(w.shape[1] for w, _ in padded)
    param_bytes = 4 * sum(w.size + b.size for w, b in padded)
    est = (2 * param_bytes
           + 8 * 4 * tile_b * max_width                # live f32 temporaries
           + 2 * 2 * 4 * tile_b * (n_in + out_dim)     # double-buffered I/O
           + (4 << 20))
    vmem_limit = int(min(max(est, 32 << 20), 48 << 20))

    flops = 2 * batch_pad * sum(w.shape[0] * w.shape[1] for w, _ in padded)
    transcendentals = batch_pad * sum(w.shape[1] for w, _ in padded[:-1])
    bytes_accessed = 4 * batch_pad * (n_in + out_dim) + param_bytes

    kernel = functools.partial(_fnn_fused_kernel, n_in=n_in,
                               num_layers=num_layers, out_dim=out_dim)
    out = pl.pallas_call(
        kernel,
        out_shape=jax.ShapeDtypeStruct((batch_pad, out_dim), jnp.float32),
        grid_spec=pl.GridSpec(
            grid=grid,
            in_specs=in_specs,
            out_specs=pl.BlockSpec((tile_b, out_dim), lambda i: (i, 0)),
        ),
        compiler_params=pltpu.CompilerParams(
            dimension_semantics=("parallel",),   # shard batch tiles across TCs
            vmem_limit_bytes=vmem_limit,
        ),
        cost_estimate=pl.CostEstimate(
            flops=int(flops),
            transcendentals=int(transcendentals),
            bytes_accessed=int(bytes_accessed),
        ),
    )(x_p, *flat_params)

    if batch_pad != batch:
        out = out[:batch]
    return out


if __name__ == "__main__":
    # layers = [input, hidden, hidden, output], e.g. a PDE net mapping (x, t) -> u
    layers = [2, 32, 32, 1]

    key = jax.random.PRNGKey(0)
    key, pkey, xkey1, xkey2 = jax.random.split(key, 4)

    params = init_fnn_params(pkey, layers)
    packed = pad_fnn_params(params)      # hoisted: padded once, reused per call

    def ref_forward(x):
        h = x
        for i, (w, b) in enumerate(params):
            h = h @ w + b
            if i < len(params) - 1:
                h = jnp.tanh(h)
        return h

    # Small single-tile case (batch = 8).
    x_small = jax.random.normal(xkey1, (8, layers[0]), dtype=jnp.float32)
    out_small = jax.block_until_ready(fnn_forward(x_small, packed))
    assert out_small.shape == (8, layers[-1])
    assert jnp.allclose(out_small, ref_forward(x_small), atol=1e-5), \
        "mismatch vs reference (small batch)"

    # Multi-tile case with batch padding (exercises grid > 1 + adaptive tiling).
    x_big = jax.random.normal(xkey2, (200, layers[0]), dtype=jnp.float32)
    out_big = jax.block_until_ready(fnn_forward(x_big, packed))
    assert out_big.shape == (200, layers[-1])
    assert jnp.allclose(out_big, ref_forward(x_big), atol=1e-5), \
        "mismatch vs reference (multi-tile batch)"

    # TODO(synk): dde `equation` residual terms and wandb logging are outside
    # the forward pass and are intentionally not implemented.
    print("KERNEL_OK")
</pallas_src>

<mosaic_0001>
module attributes {stable_mosaic.version = 11 : i64} {
  func.func @_fnn_fused_kernel(%arg0: i32, %arg1: memref<8x2xf32, #tpu.memory_space<vmem>>, %arg2: memref<2x128xf32, #tpu.memory_space<vmem>>, %arg3: memref<1x128xf32, #tpu.memory_space<vmem>>, %arg4: memref<128x128xf32, #tpu.memory_space<vmem>>, %arg5: memref<1x128xf32, #tpu.memory_space<vmem>>, %arg6: memref<128x128xf32, #tpu.memory_space<vmem>>, %arg7: memref<1x128xf32, #tpu.memory_space<vmem>>, %arg8: memref<8x1xf32, #tpu.memory_space<vmem>>) attributes {dimension_semantics = [#tpu.dimension_semantics<parallel>], iteration_bounds = array<i64: 1>, scalar_prefetch = 0 : i64, scratch_operands = 0 : i64, tpu.core_type = #tpu.core_type<tc>, window_params = [{transform_indices = @transform_0, window_bounds = array<i64: 8, 2>}, {pipeline_mode = #tpu.pipeline_mode<synchronous>, transform_indices = @transform_1, window_bounds = array<i64: 2, 128>}, {pipeline_mode = #tpu.pipeline_mode<synchronous>, transform_indices = @transform_2, window_bounds = array<i64: 1, 128>}, {pipeline_mode = #tpu.pipeline_mode<synchronous>, transform_indices = @transform_3, window_bounds = array<i64: 128, 128>}, {pipeline_mode = #tpu.pipeline_mode<synchronous>, transform_indices = @transform_4, window_bounds = array<i64: 1, 128>}, {pipeline_mode = #tpu.pipeline_mode<synchronous>, transform_indices = @transform_5, window_bounds = array<i64: 128, 128>}, {pipeline_mode = #tpu.pipeline_mode<synchronous>, transform_indices = @transform_6, window_bounds = array<i64: 1, 128>}, {transform_indices = @transform_7, window_bounds = array<i64: 8, 1>}]} {
    %c0 = arith.constant 0 : index
    %c0_0 = arith.constant 0 : index
    %0 = vector.load %arg1[%c0, %c0_0] : memref<8x2xf32, #tpu.memory_space<vmem>>, vector<8x1xf32>
    %c0_1 = arith.constant 0 : index
    %c0_2 = arith.constant 0 : index
    %1 = vector.load %arg2[%c0_1, %c0_2] : memref<2x128xf32, #tpu.memory_space<vmem>>, vector<1x128xf32>
    %2 = vector.broadcast %0 : vector<8x1xf32> to vector<8x128xf32>
    %3 = vector.broadcast %1 : vector<1x128xf32> to vector<8x128xf32>
    %4 = arith.mulf %2, %3 : vector<8x128xf32>
    %c0_3 = arith.constant 0 : index
    %c1 = arith.constant 1 : index
    %5 = vector.load %arg1[%c0_3, %c1] : memref<8x2xf32, #tpu.memory_space<vmem>>, vector<8x1xf32>
    %c1_4 = arith.constant 1 : index
    %c0_5 = arith.constant 0 : index
    %6 = vector.load %arg2[%c1_4, %c0_5] : memref<2x128xf32, #tpu.memory_space<vmem>>, vector<1x128xf32>
    %7 = vector.broadcast %5 : vector<8x1xf32> to vector<8x128xf32>
    %8 = vector.broadcast %6 : vector<1x128xf32> to vector<8x128xf32>
    %9 = arith.mulf %7, %8 : vector<8x128xf32>
    %10 = arith.addf %4, %9 : vector<8x128xf32>
    %c0_6 = arith.constant 0 : index
    %c0_7 = arith.constant 0 : index
    %11 = vector.load %arg3[%c0_6, %c0_7] : memref<1x128xf32, #tpu.memory_space<vmem>>, vector<1x128xf32>
    %12 = vector.broadcast %11 : vector<1x128xf32> to vector<8x128xf32>
    %13 = arith.addf %10, %12 : vector<8x128xf32>
    %14 = math.tanh %13 : vector<8x128xf32>
    %c0_8 = arith.constant 0 : index
    %c0_9 = arith.constant 0 : index
    %15 = vector.load %arg4[%c0_8, %c0_9] : memref<128x128xf32, #tpu.memory_space<vmem>>, vector<128x128xf32>
    %cst = arith.constant dense<0.000000e+00> : vector<8x128xf32>
    %16 = tpu.matmul %14, %15, %cst {dimension_numbers = #tpu.dot_dimension_numbers<[1], [0], [0], [1], [0, 0, 1, 1], [], []>, precision = #tpu.contract_precision<fp32>} : vector<8x128xf32>, vector<128x128xf32>, vector<8x128xf32> -> vector<8x128xf32>
    %c0_10 = arith.constant 0 : index
    %c0_11 = arith.constant 0 : index
    %17 = vector.load %arg5[%c0_10, %c0_11] : memref<1x128xf32, #tpu.memory_space<vmem>>, vector<1x128xf32>
    %18 = vector.broadcast %17 : vector<1x128xf32> to vector<8x128xf32>
    %19 = arith.addf %16, %18 : vector<8x128xf32>
    %20 = math.tanh %19 : vector<8x128xf32>
    %c0_12 = arith.constant 0 : index
    %c0_13 = arith.constant 0 : index
    %21 = vector.load %arg6[%c0_12, %c0_13] : memref<128x128xf32, #tpu.memory_space<vmem>>, vector<128x128xf32>
    %cst_14 = arith.constant dense<0.000000e+00> : vector<8x128xf32>
    %22 = tpu.matmul %20, %21, %cst_14 {dimension_numbers = #tpu.dot_dimension_numbers<[1], [0], [0], [1], [0, 0, 1, 1], [], []>, precision = #tpu.contract_precision<fp32>} : vector<8x128xf32>, vector<128x128xf32>, vector<8x128xf32> -> vector<8x128xf32>
    %c0_15 = arith.constant 0 : index
    %c0_16 = arith.constant 0 : index
    %23 = vector.load %arg7[%c0_15, %c0_16] : memref<1x128xf32, #tpu.memory_space<vmem>>, vector<1x128xf32>
    %24 = vector.broadcast %23 : vector<1x128xf32> to vector<8x128xf32>
    %25 = arith.addf %22, %24 : vector<8x128xf32>
    %26 = vector.extract_strided_slice %25 {offsets = [0, 0], sizes = [8, 1], strides = [1, 1]} : vector<8x128xf32> to vector<8x1xf32>
    %c0_17 = arith.constant 0 : index
    %c0_18 = arith.constant 0 : index
    %27 = vector.load %arg8[%c0_17, %c0_18] : memref<8x1xf32, #tpu.memory_space<vmem>>, vector<8x1xf32>
    tpu.vector_store %arg8[%c0_17, %c0_18], %26 {strides = array<i32>} : memref<8x1xf32, #tpu.memory_space<vmem>>, vector<8x1xf32>,
    return
  }
  func.func @transform_0(%arg0: i32) -> (i32, i32) {
    %c0_i32 = arith.constant 0 : i32
    %c0_i32_0 = arith.constant 0 : i32
    return %arg0, %c0_i32 : i32, i32
  }
  func.func @transform_1(%arg0: i32) -> (i32, i32) {
    %c0_i32 = arith.constant 0 : i32
    %c0_i32_0 = arith.constant 0 : i32
    %c0_i32_1 = arith.constant 0 : i32
    return %c0_i32, %c0_i32_0 : i32, i32
  }
  func.func @transform_2(%arg0: i32) -> (i32, i32) {
    %c0_i32 = arith.constant 0 : i32
    %c0_i32_0 = arith.constant 0 : i32
    %c0_i32_1 = arith.constant 0 : i32
    return %c0_i32, %c0_i32_0 : i32, i32
  }
  func.func @transform_3(%arg0: i32) -> (i32, i32) {
    %c0_i32 = arith.constant 0 : i32
    %c0_i32_0 = arith.constant 0 : i32
    %c0_i32_1 = arith.constant 0 : i32
    return %c0_i32, %c0_i32_0 : i32, i32
  }
  func.func @transform_4(%arg0: i32) -> (i32, i32) {
    %c0_i32 = arith.constant 0 : i32
    %c0_i32_0 = arith.constant 0 : i32
    %c0_i32_1 = arith.constant 0 : i32
    return %c0_i32, %c0_i32_0 : i32, i32
  }
  func.func @transform_5(%arg0: i32) -> (i32, i32) {
    %c0_i32 = arith.constant 0 : i32
    %c0_i32_0 = arith.constant 0 : i32
    %c0_i32_1 = arith.constant 0 : i32
    return %c0_i32, %c0_i32_0 : i32, i32
  }
  func.func @transform_6(%arg0: i32) -> (i32, i32) {
    %c0_i32 = arith.constant 0 : i32
    %c0_i32_0 = arith.constant 0 : i32
    %c0_i32_1 = arith.constant 0 : i32
    return %c0_i32, %c0_i32_0 : i32, i32
  }
  func.func @transform_7(%arg0: i32) -> (i32, i32) {
    %c0_i32 = arith.constant 0 : i32
    %c0_i32_0 = arith.constant 0 : i32
    return %arg0, %c0_i32 : i32, i32
  }
}

</mosaic_0001>

<bundles_post_ra>
// kernel: tpu_custom_call.1
= control target key start
LH: loop header
LB: loop body
LE: loop exit
PB: predicated region body
PF: predicated region fallthrough
CT: control target
= control target key end

     0   :  { %12 = vsyncpa [#allocation3], 0  ;;  %s3058_s0 = inlined_call_operand.vmem [shape: f32[8,2], index: 0, kind: input, shape index: {}]   ;;  %s3059_s1 = inlined_call_operand.vmem [shape: f32[2,128], index: 1, kind: input, shape index: {}]   ;;  %s3060_s2 = inlined_call_operand.vmem [shape: f32[1,128], index: 2, kind: input, shape index: {}]   ;;  %s3061_s3 = inlined_call_operand.hbm [shape: f32[128,128], index: 3, kind: input, shape index: {}]   ;;  %s3062_s4 = inlined_call_operand.vmem [shape: f32[1,128], index: 4, kind: input, shape index: {}]   ;;  %s3063_s5 = inlined_call_operand.hbm [shape: f32[128,128], index: 5, kind: input, shape index: {}]   ;;  %s3064_s6 = inlined_call_operand.vmem [shape: f32[1,128], index: 6, kind: input, shape index: {}]   ;;  %s3065_s7 = inlined_call_operand.vmem [shape: f32[8,1], index: 7, kind: output, shape index: {}]  }
   0x1   :  { %13 = vsyncpa [#allocation5], 0  ;;  %s2425_s24 = smov [#allocation2]   ;;  %s2377_s28 = scalar_lea.hbm %s3061_s3, 2048 }
   0x2   :  { %s25_s25 = sshll.u32 %s2425_s24, 4  ;;  %p2378_p0 = scmp.ne.s32.totalorder %s3061_s3, %s2377_s28  ;;  %s26_s25 = int_to_ptr.vmem [resolvable:$true] %s25_s25 }
   0x3   :  { %p2381_p1 = scmp.lt.u32.totalorder %s2377_s28, %s3061_s3 }
   0x5   :  { %p2383_p2 = pnand %p2381_p1, %p2378_p0 }
   0x7   :  { %2386 = shalt.err (!%p2383_p2)
}
   0x8   :  { %s2387_s10 = scalar_lea.vmem %s26_s25, 2048  ;;  %p2392_p4 = scmp.lt.s32.totalorder %s26_s25, %s26_s25 }
   0x9   :  { %p2388_p3 = scmp.ne.s32.totalorder %s26_s25, %s2387_s10  ;;  %p2393_p5 = scmp.lt.s32.totalorder %s2387_s10, %s2387_s10 }
   0xb   :  { %p2394_p6 = por %p2393_p5, %p2392_p4 }
   0xd   :  { %p2395_p7 = pnand %p2394_p6, %p2388_p3 }
   0xf   :  { %2398 = shalt.err (!%p2395_p7)
}
  0x10   :  { %s2426_s11 = smov 128   ;;  %s2427_s12 = smov 8  }
  0x11   :  { %31 = dma.hbm_to_vmem [thread:$0]  %s3061_s3, 2048, %s26_s25, [#allocation3], %s2426_s11, %s2426_s11, %s2427_s12  }
  0x12   :  { %s2428_s15 = smov [#allocation4]   ;;  %s2399_s19 = scalar_lea.hbm %s3063_s5, 2048 }
  0x13   :  { %s39_s16 = sshll.u32 %s2428_s15, 4  ;;  %p2400_p8 = scmp.ne.s32.totalorder %s3063_s5, %s2399_s19  ;;  %s40_s16 = int_to_ptr.vmem [resolvable:$true] %s39_s16 }
  0x14   :  { %p2403_p9 = scmp.lt.u32.totalorder %s2399_s19, %s3063_s5 }
  0x16   :  { %p2405_p10 = pnand %p2403_p9, %p2400_p8 }
  0x18   :  { %2408 = shalt.err (!%p2405_p10)
}
  0x19   :  { %s2409_s24 = scalar_lea.vmem %s40_s16, 2048  ;;  %p2414_p12 = scmp.lt.s32.totalorder %s40_s16, %s40_s16 }
  0x1a   :  { %p2410_p11 = scmp.ne.s32.totalorder %s40_s16, %s2409_s24  ;;  %p2415_p13 = scmp.lt.s32.totalorder %s2409_s24, %s2409_s24 }
  0x1c   :  { %p2416_p0 = por %p2415_p13, %p2414_p12 }
  0x1e   :  { %p2417_p1 = pnand %p2416_p0, %p2410_p11 }
  0x20   :  { %2420 = shalt.err (!%p2417_p1)
}
  0x21   :  { %45 = dma.hbm_to_vmem [thread:$0]  %s3063_s5, 2048, %s40_s16, [#allocation5], %s2426_s11, %s2426_s11, %s2427_s12  }
  0x22   :  { %2421 = dma.done.wait [#allocation3], 2048  }
  0x23   :  { %2422 = vsyncadd [#allocation3], 4294965248 }
  0x24   :  { %2423 = dma.done.wait [#allocation5], 2048  }
  0x25   :  { %2424 = vsyncadd [#allocation5], 4294965248  ;;  %v2429_v0 = vmov 0   ;;  %v2430_v1 = vmov 0.0|0.0   ;;  %v54_v2 = vld [vmem:[%s3058_s0] sm:$0xff]  ;;  %v87_v4 = vld [vmem:[#allocation2 + $0x8] sm:$0xff] }
  0x26   :  { %2371 = vset.pattern.permute.xlu0 %v2429_v0  ;;  %2052 = vmatprep.subr.bf16.mxu0 %v2430_v1  ;;  %v86_v3 = vld [vmem:[#allocation2] sm:$0xff]  ;;  %v88_v6 = vld [vmem:[#allocation2 + $0x10] sm:$0xff]  ;;  %v89_v7 = vld [vmem:[#allocation2 + $0x18] sm:$0xff]  ;;  %v113_v8 = vand.u32 4294901760, %v87_v4  ;;  %v2431_v17 = vmov 1   ;;  %vm2432_vm0 = vmmov 0  }
  0x27   :  { %2196 = vmatprep.subr.bf16.mxu1 %v2430_v1  ;;  %58 = vperm.xlu0 %2371, %v54_v2   ;;  %v110_v5 = vand.u32 4294901760, %v86_v3  ;;  %v116_v9 = vand.u32 4294901760, %v88_v6  ;;  %v119_v10 = vand.u32 4294901760, %v89_v7  ;;  %v90_v15 = vld [vmem:[#allocation2 + $0x20] sm:$0xff]  ;;  %v91_v16 = vld [vmem:[#allocation2 + $0x28] sm:$0xff]  ;;  %v92_v22 = vld [vmem:[#allocation2 + $0x30] sm:$0xff] }
  0x28   :  { %v2507_v13 = vsub.f32 %v87_v4, %v113_v8  ;;  %v122_v20 = vand.u32 4294901760, %v90_v15  ;;  %v125_v21 = vand.u32 4294901760, %v91_v16  ;;  %v93_v23 = vld [vmem:[#allocation2 + $0x38] sm:$0xff]  ;;  %v128_v25 = vand.u32 4294901760, %v92_v22  ;;  %v94_v27 = vld [vmem:[#allocation2 + $0x40] sm:$0xff]  ;;  %v95_v28 = vld [vmem:[#allocation2 + $0x48] sm:$0xff] }
  0x29   :  { %v2503_v11 = vsub.f32 %v86_v3, %v110_v5  ;;  %v2505_v12 = vpack.c.bf16 %v113_v8, %v110_v5  ;;  %v2509_v14 = vsub.f32 %v88_v6, %v116_v9  ;;  %v2511_v18 = vsub.f32 %v89_v7, %v119_v10  ;;  %v96_v32 = vld [vmem:[#allocation2 + $0x50] sm:$0xff]  ;;  %v97_v33 = vld [vmem:[#allocation2 + $0x58] sm:$0xff]  ;;  %v98_v37 = vld [vmem:[#allocation2 + $0x60] sm:$0xff] }
  0x2a   :  { %v2514_v19 = vpack.c.bf16 %v119_v10, %v116_v9  ;;  %v2518_v24 = vpack.c.bf16 %v125_v21, %v122_v20  ;;  %v131_v26 = vand.u32 4294901760, %v93_v23  ;;  %v134_v30 = vand.u32 4294901760, %v94_v27  ;;  %v99_v38 = vld [vmem:[#allocation2 + $0x68] sm:$0xff]  ;;  %v100_v46 = vld [vmem:[#allocation2 + $0x70] sm:$0xff]  ;;  %v101_v47 = vld [vmem:[#allocation2 + $0x78] sm:$0xff] }
  0x2b   :  { %2372 = vset.pattern.permute.xlu0 %v2431_v17  ;;  %2054 = vmatpush3.bf16.msra.mxu0 %v2505_v12  ;;  %v137_v31 = vand.u32 4294901760, %v95_v28  ;;  %v140_v35 = vand.u32 4294901760, %v96_v32  ;;  %v143_v36 = vand.u32 4294901760, %v97_v33  ;;  %v146_v39 = vand.u32 4294901760, %v98_v37 }
  0x2c   :  { %68 = vperm.xlu0 %2372, %v54_v2   ;;  %2055 = vmatprep.subr.bf16.mxu0 %v2430_v1  ;;  %v2522_v29 = vpack.c.bf16 %v131_v26, %v128_v25  ;;  %v149_v40 = vand.u32 4294901760, %v99_v38  ;;  %v2532_v42 = vsub.f32 %v90_v15, %v122_v20  ;;  %v2534_v43 = vsub.f32 %v91_v16, %v125_v21 }
  0x2d   :  { %v2526_v34 = vpack.c.bf16 %v137_v31, %v134_v30  ;;  %v2530_v41 = vpack.c.bf16 %v143_v36, %v140_v35  ;;  %v2536_v44 = vsub.f32 %v92_v22, %v128_v25  ;;  %v2538_v45 = vsub.f32 %v93_v23, %v131_v26 }
  0x2e   :  { %v2541_v48 = vsub.f32 %v94_v27, %v134_v30  ;;  %v2543_v49 = vsub.f32 %v95_v28, %v137_v31  ;;  %v2545_v50 = vsub.f32 %v96_v32, %v140_v35  ;;  %v2547_v51 = vsub.f32 %v97_v33, %v143_v36 }
  0x2f   :  { %2057 = vmatpush3.bf16.msra.mxu0 %v2514_v19  ;;  %v2549_v52 = vpack.c.bf16 %v149_v40, %v146_v39  ;;  %v2551_v53 = vsub.f32 %v98_v37, %v146_v39  ;;  %v2553_v54 = vsub.f32 %v99_v38, %v149_v40  ;;  %v152_v55 = vand.u32 4294901760, %v100_v46 }
  0x30   :  { %2058 = vmatprep.subr.bf16.mxu0 %v2430_v1  ;;  %v155_v56 = vand.u32 4294901760, %v101_v47  ;;  %v203_v57 = vand.u32 4294901760, %v2503_v11  ;;  %v2433_v59 = vmov 0.0   ;;  %v210_v60 = vand.u32 4294901760, %v2507_v13 }
  0x31   :  { %v2558_v58 = vsub.f32 %v100_v46, %v152_v55  ;;  %1664 = vmatprep.mubr.msk.f32.mxu0 %vm2432_vm0, %v2433_v59  ;;  %1874 = vmatprep.mubr.msk.f32.mxu1 %vm2432_vm0, %v2433_v59  ;;  %v217_v3 = vand.u32 4294901760, %v2509_v14  ;;  %v224_v4 = vand.u32 4294901760, %v2511_v18  ;;  %v231_v15 = vand.u32 4294901760, %v2532_v42 }
  0x32   :  { %v2563_v61 = vsub.f32 %v101_v47, %v155_v56  ;;  %v204_v62 = vsub.f32 %v2503_v11, %v203_v57  ;;  %v211_v63 = vsub.f32 %v2507_v13, %v210_v60  ;;  %v2574_v0 = vpack.c.bf16 %v155_v56, %v152_v55 }
  0x33   :  { %2060 = vmatpush3.bf16.msra.mxu0 %v2518_v24  ;;  %v218_v6 = vsub.f32 %v2509_v14, %v217_v3  ;;  %v225_v7 = vsub.f32 %v2511_v18, %v224_v4  ;;  %v238_v16 = vand.u32 4294901760, %v2534_v43  ;;  %v232_v20 = vsub.f32 %v2532_v42, %v231_v15 }
  0x34   :  { %2061 = vmatprep.subr.bf16.mxu0 %v2430_v1  ;;  %v205_v2 = vand.u32 4294901760, %v204_v62  ;;  %v212_v5 = vand.u32 4294901760, %v211_v63  ;;  %v245_v25 = vand.u32 4294901760, %v2536_v44  ;;  %v252_v26 = vand.u32 4294901760, %v2538_v45 }
  0x35   :  { %v219_v9 = vand.u32 4294901760, %v218_v6  ;;  %v226_v10 = vand.u32 4294901760, %v225_v7  ;;  %v239_v21 = vsub.f32 %v2534_v43, %v238_v16  ;;  %v233_v22 = vand.u32 4294901760, %v232_v20 }
  0x36   :  { %v2585_v8 = vpack.c.bf16 %v212_v5, %v205_v2  ;;  %v246_v28 = vsub.f32 %v2536_v44, %v245_v25  ;;  %v253_v30 = vsub.f32 %v2538_v45, %v252_v26  ;;  %v259_v33 = vand.u32 4294901760, %v2541_v48 }
  0x37   :  { %2063 = vmatpush3.bf16.msra.mxu0 %v2522_v29  ;;  %v2591_v17 = vpack.c.bf16 %v226_v10, %v219_v9  ;;  %v240_v23 = vand.u32 4294901760, %v239_v21  ;;  %v3072_v35 = vand.u32 4294901760, %v2543_v49  ;;  %v3071_v46 = vand.u32 4294901760, %v2545_v50 }
  0x38   :  { %2064 = vmatprep.subr.bf16.mxu0 %v2430_v1  ;;  %v247_v31 = vand.u32 4294901760, %v246_v28  ;;  %v254_v32 = vand.u32 4294901760, %v253_v30  ;;  %v260_v37 = vsub.f32 %v2541_v48, %v259_v33  ;;  %v3070_v47 = vand.u32 4294901760, %v2547_v51 }
  0x39   :  { %v2601_v27 = vpack.c.bf16 %v240_v23, %v233_v22  ;;  %v267_v38 = vsub.f32 %v2543_v49, %v3072_v35  ;;  %v274_v56 = vsub.f32 %v2545_v50, %v3071_v46  ;;  %v3069_v5 = vand.u32 4294901760, %v2551_v53 }
  0x3a   :  { %v2086_v36 = vpack.c.bf16 %v254_v32, %v247_v31  ;;  %v261_v39 = vand.u32 4294901760, %v260_v37  ;;  %v281_v62 = vsub.f32 %v2547_v51, %v3070_v47  ;;  %v3068_v6 = vand.u32 4294901760, %v2553_v54 }
  0x3b   :  { %2066 = vmatpush3.bf16.msra.mxu0 %v2526_v34  ;;  %v268_v40 = vand.u32 4294901760, %v267_v38  ;;  %v275_v63 = vand.u32 4294901760, %v274_v56  ;;  %v288_v9 = vsub.f32 %v2551_v53, %v3069_v5  ;;  %v3067_v22 = vand.u32 4294901760, %v2558_v58 }
  0x3c   :  { %2067 = vmatprep.subr.bf16.mxu0 %v2430_v1  ;;  %v282_v2 = vand.u32 4294901760, %v281_v62  ;;  %v295_v10 = vsub.f32 %v2553_v54, %v3068_v6  ;;  %v3066_v23 = vand.u32 4294901760, %v2563_v61  ;;  %v2107_v56 = vpack.c.bf16 %v2534_v43, %v2532_v42 }
  0x3d   :  { %v2089_v55 = vpack.c.bf16 %v268_v40, %v261_v39  ;;  %v289_v20 = vand.u32 4294901760, %v288_v9  ;;  %v302_v30 = vsub.f32 %v2558_v58, %v3067_v22  ;;  %v2101_v39 = vpack.c.bf16 %v2507_v13, %v2503_v11 }
  0x3e   :  { %v2092_v7 = vpack.c.bf16 %v282_v2, %v275_v63  ;;  %v296_v21 = vand.u32 4294901760, %v295_v10  ;;  %v309_v31 = vsub.f32 %v2563_v61, %v3066_v23  ;;  %v2104_v40 = vpack.c.bf16 %v2511_v18, %v2509_v14  ;;  %v1425_v23 = vld [vmem:[%s3060_s2] ss:$0 sm:$0xff] }
  0x3f   :  { %2069 = vmatpush3.bf16.msra.mxu0 %v2530_v41  ;;  %v303_v32 = vand.u32 4294901760, %v302_v30  ;;  %v2110_v62 = vpack.c.bf16 %v2538_v45, %v2536_v44  ;;  %v2113_v63 = vpack.c.bf16 %v2543_v49, %v2541_v48  ;;  %v2116_v2 = vpack.c.bf16 %v2547_v51, %v2545_v50  ;;  %v1424_v30 = vld [vmem:[%s3059_s1 + $0x1] ss:$0 sm:$0xff] }
  0x40   :  { %2070 = vmatprep.subr.bf16.mxu0 %v2430_v1  ;;  %v2095_v28 = vpack.c.bf16 %v296_v21, %v289_v20  ;;  %v310_v37 = vand.u32 4294901760, %v309_v31  ;;  %v2119_v9 = vpack.c.bf16 %v2553_v54, %v2551_v53  ;;  %v2122_v10 = vpack.c.bf16 %v2563_v61, %v2558_v58  ;;  %v1423_v21 = vld [vmem:[%s3059_s1] ss:$0 sm:$0xff] }
  0x41   :  { %v2155_v11 = vpack.c.bf16 %v238_v16, %v231_v15  ;;  %v2158_v13 = vpack.c.bf16 %v252_v26, %v245_v25  ;;  %v3077_v14 = vand.u32 4294901760, %v2543_v49  ;;  %v3078_v42 = vand.u32 4294901760, %v2545_v50  ;;  %v761_v15 = vld [vmem:[#allocation4 + $0x50] sm:$0xff]  ;;  %v762_v16 = vld [vmem:[#allocation4 + $0x58] sm:$0xff] }
  0x42   :  { %v2098_v38 = vpack.c.bf16 %v310_v37, %v303_v32  ;;  %v3079_v43 = vand.u32 4294901760, %v2547_v51  ;;  %v3080_v44 = vand.u32 4294901760, %v2551_v53  ;;  %v3081_v45 = vand.u32 4294901760, %v2553_v54  ;;  %v758_v51 = vld [vmem:[#allocation4 + $0x38] sm:$0xff]  ;;  %v759_v54 = vld [vmem:[#allocation4 + $0x40] sm:$0xff] }
  0x43   :  { %2072 = vmatpush3.bf16.msra.mxu0 %v2549_v52  ;;  %v2161_v18 = vpack.c.bf16 %v3077_v14, %v259_v33  ;;  %v3082_v48 = vand.u32 4294901760, %v2558_v58  ;;  %v3083_v49 = vand.u32 4294901760, %v2563_v61  ;;  %v796_v53 = vand.u32 4294901760, %v758_v51  ;;  %v760_v58 = vld [vmem:[#allocation4 + $0x48] sm:$0xff] }
  0x44   :  { %2073 = vmatprep.subr.bf16.mxu0 %v2430_v1  ;;  %v799_v61 = vand.u32 4294901760, %v759_v54  ;;  %v805_v25 = vand.u32 4294901760, %v761_v15  ;;  %v808_v26 = vand.u32 4294901760, %v762_v16  ;;  %vm1415_vm1 = vcmask 7168  }
  0x46   :  { %v2824_v33 = vpack.c.bf16 %v808_v26, %v805_v25 }
  0x47   :  { %2075 = vmatpush3.bf16.msra.mxu0 %v2574_v0 }
  0x48   :  { %2076 = vmatprep.subr.bf16.mxu0 %v2430_v1 }
  0xa6   :  { %v59_v20 = vpop.permute.xlu0 %58 }
  0xa7   :  { %v65_v32 = vmul.f32 %v1423_v21, %v59_v20 }
  0xab   :  { %v69_v31 = vpop.permute.xlu0 %68 }
  0xac   :  { %v75_v37 = vmul.f32 %v1424_v30, %v69_v31  ;;  %v765_v31 = vld [vmem:[#allocation4 + $0x70] sm:$0xff] }
  0xae   :  { %v76_v22 = vadd.f32 %v75_v37, %v65_v32  ;;  %v766_v32 = vld [vmem:[#allocation4 + $0x78] sm:$0xff]  ;;  %v2836_v37 = vsub.f32 %v759_v54, %v799_v61 }
  0xb0   :  { %v84_v6 = vadd.f32 %v1425_v23, %v76_v22 }
  0xb2   :  { %2373 = vtanh.f32 %v84_v6 }
  0xbc   :  { %v2374_v5 = vpop.eup %2373 }
  0xbd   :  { %v2666_v47 = vand.u32 4294901760, %v2374_v5 }
  0xbf   :  { %v2669_v46 = vsub.f32 %v2374_v5, %v2666_v47  ;;  %v754_v5 = vld [vmem:[#allocation4 + $0x18] sm:$0xff] }
  0xc1   :  { %v192_v35 = vand.u32 4294901760, %v2669_v46 }
  0xc3   :  { %v193_v20 = vsub.f32 %v2669_v46, %v192_v35 }
  0xc5   :  { %v194_v21 = vand.u32 4294901760, %v193_v20 }
  0xc7   :  { %1665 = vmatmul.mubr.f32.vlgmr.msra.gmra.mrb[0].mxu0 %v194_v21  ;;  %v2840_v21 = vsub.f32 %v761_v15, %v805_v25 }
  0xc8   :  { %2078 = vmatpush3.bf16.msra.mxu0 %v2585_v8  ;;  %1699 = vmatprep.mubr.msk.f32.mxu0 %vm2432_vm0, %v2433_v59  ;;  %v751_v8 = vld [vmem:[#allocation4] sm:$0xff] }
  0xc9   :  { %2079 = vmatprep.subr.bf16.mxu0 %v2430_v1 }
  0xcc   :  { %2081 = vmatpush3.bf16.msra.mxu0 %v2591_v17  ;;  %v752_v17 = vld [vmem:[#allocation4 + $0x8] sm:$0xff] }
  0xcd   :  { %2082 = vmatprep.subr.bf16.mxu0 %v2430_v1 }
  0xd0   :  { %2084 = vmatpush3.bf16.msra.mxu0 %v2601_v27  ;;  %v753_v27 = vld [vmem:[#allocation4 + $0x10] sm:$0xff] }
  0xd1   :  { %2085 = vmatprep.subr.bf16.mxu0 %v2430_v1  ;;  %v781_v6 = vand.u32 4294901760, %v753_v27 }
  0xd4   :  { %2087 = vmatpush3.bf16.msra.mxu0 %v2086_v36  ;;  %v775_v36 = vand.u32 4294901760, %v751_v8 }
  0xd5   :  { %2088 = vmatprep.subr.bf16.mxu0 %v2430_v1 }
  0xd6   :  { %v2694_v23 = vsub.f32 %v751_v8, %v775_v36  ;;  %v2842_v8 = vsub.f32 %v762_v16, %v808_v26  ;;  %v924_v16 = vand.u32 4294901760, %v2836_v37 }
  0xd8   :  { %2090 = vmatpush3.bf16.msra.mxu0 %v2089_v55  ;;  %v778_v55 = vand.u32 4294901760, %v752_v17 }
  0xd9   :  { %2091 = vmatprep.subr.bf16.mxu0 %v2430_v1 }
  0xda   :  { %v2692_v22 = vpack.c.bf16 %v778_v55, %v775_v36 }
  0xdc   :  { %2093 = vmatpush3.bf16.msra.mxu0 %v2092_v7  ;;  %v784_v7 = vand.u32 4294901760, %v754_v5  ;;  %2198 = vmatpush3.bf16.msra.mxu1 %v2692_v22 }
  0xdd   :  { %2094 = vmatprep.subr.bf16.mxu0 %v2430_v1  ;;  %2199 = vmatprep.subr.bf16.mxu1 %v2430_v1 }
  0xde   :  { %v2700_v30 = vsub.f32 %v754_v5, %v784_v7  ;;  %v820_v5 = vand.u32 4294901760, %v766_v32 }
  0xe0   :  { %2096 = vmatpush3.bf16.msra.mxu0 %v2095_v28  ;;  %v2696_v28 = vsub.f32 %v752_v17, %v778_v55  ;;  %v817_v55 = vand.u32 4294901760, %v765_v31 }
  0xe1   :  { %2097 = vmatprep.subr.bf16.mxu0 %v2430_v1 }
  0xe4   :  { %2099 = vmatpush3.bf16.msra.mxu0 %v2098_v38  ;;  %v2698_v38 = vsub.f32 %v753_v27, %v781_v6 }
  0xe5   :  { %2100 = vmatprep.subr.bf16.mxu0 %v2430_v1 }
  0xe7   :  { %1700 = vmatmul.mubr.f32.vlgmr.msra.gmra.mrb[0].mxu0 %v2666_v47 }
  0xe8   :  { %2102 = vmatpush3.bf16.msra.mxu0 %v2101_v39  ;;  %1734 = vmatprep.mubr.msk.f32.mxu0 %vm2432_vm0, %v2433_v59  ;;  %v2703_v39 = vpack.c.bf16 %v784_v7, %v781_v6  ;;  %v868_v6 = vand.u32 4294901760, %v2694_v23  ;;  %v875_v7 = vand.u32 4294901760, %v2696_v28 }
  0xe9   :  { %2103 = vmatprep.subr.bf16.mxu0 %v2430_v1 }
  0xea   :  { %2201 = vmatpush3.bf16.msra.mxu1 %v2703_v39  ;;  %v876_v14 = vsub.f32 %v2696_v28, %v875_v7 }
  0xeb   :  { %2202 = vmatprep.subr.bf16.mxu1 %v2430_v1 }
  0xec   :  { %2105 = vmatpush3.bf16.msra.mxu0 %v2104_v40  ;;  %v2149_v40 = vpack.c.bf16 %v210_v60, %v203_v57  ;;  %v2164_v57 = vpack.c.bf16 %v3079_v43, %v3078_v42  ;;  %v2167_v60 = vpack.c.bf16 %v3081_v45, %v3080_v44  ;;  %v877_v42 = vand.u32 4294901760, %v876_v14 }
  0xed   :  { %2106 = vmatprep.subr.bf16.mxu0 %v2430_v1  ;;  %v882_v43 = vand.u32 4294901760, %v2698_v38 }
  0xef   :  { %v883_v45 = vsub.f32 %v2698_v38, %v882_v43 }
  0xf0   :  { %2108 = vmatpush3.bf16.msra.mxu0 %v2107_v56  ;;  %v2152_v56 = vpack.c.bf16 %v224_v4, %v217_v3  ;;  %v2170_v3 = vpack.c.bf16 %v3083_v49, %v3082_v48 }
  0xf1   :  { %2109 = vmatprep.subr.bf16.mxu0 %v2430_v1  ;;  %v884_v48 = vand.u32 4294901760, %v883_v45 }
  0xf4   :  { %2111 = vmatpush3.bf16.msra.mxu0 %v2110_v62 }
  0xf5   :  { %2112 = vmatprep.subr.bf16.mxu0 %v2430_v1 }
  0xf8   :  { %2114 = vmatpush3.bf16.msra.mxu0 %v2113_v63 }
  0xf9   :  { %2115 = vmatprep.subr.bf16.mxu0 %v2430_v1 }
  0xfc   :  { %2117 = vmatpush3.bf16.msra.mxu0 %v2116_v2 }
  0xfd   :  { %2118 = vmatprep.subr.bf16.mxu0 %v2430_v1 }
 0x100   :  { %2120 = vmatpush3.bf16.msra.mxu0 %v2119_v9 }
 0x101   :  { %2121 = vmatprep.subr.bf16.mxu0 %v2430_v1 }
 0x104   :  { %2123 = vmatpush3.bf16.msra.mxu0 %v2122_v10  ;;  %v2834_v10 = vsub.f32 %v758_v51, %v796_v53 }
 0x105   :  { %2124 = vmatprep.subr.bf16.mxu0 %v2430_v1 }
 0x107   :  { %1735 = vmatmul.mubr.f32.vlgmr.msra.gmra.mrb[0].mxu0 %v2669_v46  ;;  %v764_v46 = vld [vmem:[#allocation4 + $0x68] sm:$0xff] }
 0x108   :  { %2126 = vmatpush3.bf16.msra.mxu0 %v2505_v12  ;;  %1769 = vmatprep.mubr.msk.f32.mxu0 %vm2432_vm0, %v2433_v59  ;;  %v814_v62 = vand.u32 4294901760, %v764_v46 }
 0x109   :  { %2127 = vmatprep.subr.bf16.mxu0 %v2430_v1 }
 0x10a   :  { %v2848_v36 = vsub.f32 %v764_v46, %v814_v62 }
 0x10c   :  { %2129 = vmatpush3.bf16.msra.mxu0 %v2514_v19  ;;  %v3075_v45 = vand.u32 4294901760, %v2848_v36 }
 0x10d   :  { %2130 = vmatprep.subr.bf16.mxu0 %v2430_v1 }
 0x110   :  { %2132 = vmatpush3.bf16.msra.mxu0 %v2518_v24 }
 0x111   :  { %2133 = vmatprep.subr.bf16.mxu0 %v2430_v1 }
 0x114   :  { %2135 = vmatpush3.bf16.msra.mxu0 %v2522_v29 }
 0x115   :  { %2136 = vmatprep.subr.bf16.mxu0 %v2430_v1 }
 0x118   :  { %2138 = vmatpush3.bf16.msra.mxu0 %v2526_v34 }
 0x119   :  { %2139 = vmatprep.subr.bf16.mxu0 %v2430_v1 }
 0x11c   :  { %2141 = vmatpush3.bf16.msra.mxu0 %v2530_v41 }
 0x11d   :  { %2142 = vmatprep.subr.bf16.mxu0 %v2430_v1 }
 0x120   :  { %2144 = vmatpush3.bf16.msra.mxu0 %v2549_v52 }
 0x121   :  { %2145 = vmatprep.subr.bf16.mxu0 %v2430_v1 }
 0x124   :  { %2147 = vmatpush3.bf16.msra.mxu0 %v2574_v0 }
 0x125   :  { %2148 = vmatprep.subr.bf16.mxu0 %v2430_v1 }
 0x127   :  { %1770 = vmatmul.mubr.f32.vlgmr.msra.gmra.mrb[0].mxu0 %v192_v35  ;;  %v763_v35 = vld [vmem:[#allocation4 + $0x60] sm:$0xff] }
 0x128   :  { %2150 = vmatpush3.bf16.msra.mxu0 %v2149_v40  ;;  %1804 = vmatprep.mubr.msk.f32.mxu0 %vm2432_vm0, %v2433_v59  ;;  %v2853_v40 = vsub.f32 %v765_v31, %v817_v55  ;;  %v938_v31 = vand.u32 4294901760, %v2840_v21 }
 0x129   :  { %2151 = vmatprep.subr.bf16.mxu0 %v2430_v1 }
 0x12c   :  { %2153 = vmatpush3.bf16.msra.mxu0 %v2152_v56  ;;  %v2856_v56 = vpack.c.bf16 %v820_v5, %v817_v55 }
 0x12d   :  { %2154 = vmatprep.subr.bf16.mxu0 %v2430_v1 }
 0x130   :  { %2156 = vmatpush3.bf16.msra.mxu0 %v2155_v11  ;;  %v2858_v11 = vsub.f32 %v766_v32, %v820_v5  ;;  %v945_v32 = vand.u32 4294901760, %v2842_v8  ;;  %v939_v5 = vsub.f32 %v2840_v21, %v938_v31 }
 0x131   :  { %2157 = vmatprep.subr.bf16.mxu0 %v2430_v1 }
 0x132   :  { %v940_v14 = vand.u32 4294901760, %v939_v5 }
 0x134   :  { %2159 = vmatpush3.bf16.msra.mxu0 %v2158_v13  ;;  %v869_v13 = vsub.f32 %v2694_v23, %v868_v6 }
 0x135   :  { %2160 = vmatprep.subr.bf16.mxu0 %v2430_v1 }
 0x138   :  { %2162 = vmatpush3.bf16.msra.mxu0 %v2161_v18  ;;  %v870_v18 = vand.u32 4294901760, %v869_v13  ;;  %v946_v13 = vsub.f32 %v2842_v8, %v945_v32 }
 0x139   :  { %2163 = vmatprep.subr.bf16.mxu0 %v2430_v1 }
 0x13a   :  { %v2870_v44 = vpack.c.bf16 %v877_v42, %v870_v18  ;;  %v947_v18 = vand.u32 4294901760, %v946_v13 }
 0x13c   :  { %2165 = vmatpush3.bf16.msra.mxu0 %v2164_v57  ;;  %v889_v57 = vand.u32 4294901760, %v2700_v30 }
 0x13d   :  { %2166 = vmatprep.subr.bf16.mxu0 %v2430_v1 }
 0x140   :  { %2168 = vmatpush3.bf16.msra.mxu0 %v2167_v60  ;;  %v890_v60 = vsub.f32 %v2700_v30, %v889_v57 }
 0x141   :  { %2169 = vmatprep.subr.bf16.mxu0 %v2430_v1 }
 0x142   :  { %v891_v49 = vand.u32 4294901760, %v890_v60  ;;  %v2236_v60 = vpack.c.bf16 %v947_v18, %v940_v14  ;;  %v2260_v18 = vpack.c.bf16 %v2842_v8, %v2840_v21 }
 0x144   :  { %2171 = vmatpush3.bf16.msra.mxu0 %v2170_v3 }
 0x145   :  { %2172 = vmatprep.subr.bf16.mxu0 %v2430_v1 }
 0x147   :  { %1805 = vmatmul.mubr.f32.vlgmr.msra.gmra.mrb[0].mxu0 %v2666_v47 }
 0x148   :  { %2174 = vmatpush3.bf16.msra.mxu0 %v2505_v12  ;;  %1839 = vmatprep.mubr.msk.f32.mxu0 %vm2432_vm0, %v2433_v59  ;;  %v755_v12 = vld [vmem:[#allocation4 + $0x20] sm:$0xff] }
 0x149   :  { %2175 = vmatprep.subr.bf16.mxu0 %v2430_v1 }
 0x14c   :  { %2177 = vmatpush3.bf16.msra.mxu0 %v2514_v19  ;;  %v756_v19 = vld [vmem:[#allocation4 + $0x28] sm:$0xff] }
 0x14d   :  { %2178 = vmatprep.subr.bf16.mxu0 %v2430_v1 }
 0x150   :  { %2180 = vmatpush3.bf16.msra.mxu0 %v2518_v24  ;;  %v787_v24 = vand.u32 4294901760, %v755_v12 }
 0x151   :  { %2181 = vmatprep.subr.bf16.mxu0 %v2430_v1 }
 0x152   :  { %v2828_v63 = vsub.f32 %v755_v12, %v787_v24 }
 0x154   :  { %2183 = vmatpush3.bf16.msra.mxu0 %v2522_v29  ;;  %v790_v29 = vand.u32 4294901760, %v756_v19  ;;  %v896_v3 = vand.u32 4294901760, %v2828_v63 }
 0x155   :  { %2184 = vmatprep.subr.bf16.mxu0 %v2430_v1 }
 0x156   :  { %v2812_v50 = vpack.c.bf16 %v790_v29, %v787_v24  ;;  %v2830_v2 = vsub.f32 %v756_v19, %v790_v29  ;;  %v2880_v19 = vpack.c.bf16 %v891_v49, %v884_v48  ;;  %v897_v24 = vsub.f32 %v2828_v63, %v896_v3 }
 0x157   :  { %v960_v49 = vsub.f32 %v2848_v36, %v3075_v45 }
 0x158   :  { %2186 = vmatpush3.bf16.msra.mxu0 %v2526_v34  ;;  %v757_v34 = vld [vmem:[#allocation4 + $0x30] sm:$0xff]  ;;  %2204 = vmatpush3.bf16.msra.mxu1 %v2812_v50  ;;  %v903_v12 = vand.u32 4294901760, %v2830_v2  ;;  %v2251_v5 = vpack.c.bf16 %v2830_v2, %v2828_v63 }
 0x159   :  { %2187 = vmatprep.subr.bf16.mxu0 %v2430_v1  ;;  %2205 = vmatprep.subr.bf16.mxu1 %v2430_v1 }
 0x15a   :  { %v904_v29 = vsub.f32 %v2830_v2, %v903_v12  ;;  %v3085_v2 = vand.u32 4294901760, %v2848_v36 }
 0x15c   :  { %2189 = vmatpush3.bf16.msra.mxu0 %v2530_v41  ;;  %v793_v41 = vand.u32 4294901760, %v757_v34  ;;  %v905_v51 = vand.u32 4294901760, %v904_v29  ;;  %v961_v29 = vand.u32 4294901760, %v960_v49  ;;  %v2266_v49 = vpack.c.bf16 %v2858_v11, %v2853_v40 }
 0x15d   :  { %2190 = vmatprep.subr.bf16.mxu0 %v2430_v1 }
 0x15e   :  { %v2832_v9 = vsub.f32 %v757_v34, %v793_v41  ;;  %v898_v34 = vand.u32 4294901760, %v897_v24 }
 0x160   :  { %2192 = vmatpush3.bf16.msra.mxu0 %v2549_v52  ;;  %v2816_v52 = vpack.c.bf16 %v796_v53, %v793_v41  ;;  %v910_v41 = vand.u32 4294901760, %v2832_v9  ;;  %v917_v53 = vand.u32 4294901760, %v2834_v10  ;;  %v2227_v54 = vpack.c.bf16 %v905_v51, %v898_v34 }
 0x161   :  { %2193 = vmatprep.subr.bf16.mxu0 %v2430_v1  ;;  %v3074_v34 = vand.u32 4294901760, %v2853_v40  ;;  %v3073_v51 = vand.u32 4294901760, %v2858_v11  ;;  %v2254_v13 = vpack.c.bf16 %v2834_v10, %v2832_v9 }
 0x162   :  { %2207 = vmatpush3.bf16.msra.mxu1 %v2816_v52 }
 0x163   :  { %2208 = vmatprep.subr.bf16.mxu1 %v2430_v1 }
 0x164   :  { %2195 = vmatpush3.bf16.msra.mxu0 %v2574_v0  ;;  %v802_v0 = vand.u32 4294901760, %v760_v58 }
 0x166   :  { %v2820_v4 = vpack.c.bf16 %v802_v0, %v799_v61  ;;  %v2838_v20 = vsub.f32 %v760_v58, %v802_v0  ;;  %v911_v58 = vsub.f32 %v2832_v9, %v910_v41  ;;  %v918_v61 = vsub.f32 %v2834_v10, %v917_v53 }
 0x167   :  { %1840 = vmatmul.mubr.f32.vlgmr.msra.gmra.mrb[0].mxu0 %v2666_v47  ;;  %v811_v47 = vand.u32 4294901760, %v763_v35  ;;  %v3086_v10 = vand.u32 4294901760, %v2853_v40 }
 0x168   :  { %2210 = vmatpush3.bf16.msra.mxu1 %v2820_v4  ;;  %v912_v0 = vand.u32 4294901760, %v911_v58  ;;  %v919_v15 = vand.u32 4294901760, %v918_v61  ;;  %v931_v25 = vand.u32 4294901760, %v2838_v20  ;;  %v967_v61 = vsub.f32 %v2853_v40, %v3074_v34 }
 0x169   :  { %2211 = vmatprep.subr.bf16.mxu1 %v2430_v1  ;;  %v2844_v17 = vpack.c.bf16 %v814_v62, %v811_v47  ;;  %v2846_v27 = vsub.f32 %v763_v35, %v811_v47  ;;  %v925_v35 = vsub.f32 %v2836_v37, %v924_v16  ;;  %v2257_v14 = vpack.c.bf16 %v2838_v20, %v2836_v37 }
 0x16a   :  { %v2230_v26 = vpack.c.bf16 %v919_v15, %v912_v0  ;;  %v932_v46 = vsub.f32 %v2838_v20, %v931_v25  ;;  %v974_v0 = vsub.f32 %v2858_v11, %v3073_v51  ;;  %v968_v15 = vand.u32 4294901760, %v967_v61 }
 0x16b   :  { %v926_v47 = vand.u32 4294901760, %v925_v35  ;;  %v3076_v42 = vand.u32 4294901760, %v2846_v27  ;;  %v3084_v63 = vand.u32 4294901760, %v2846_v27  ;;  %v3087_v37 = vand.u32 4294901760, %v2858_v11 }
 0x16c   :  { %2213 = vmatpush3.bf16.msra.mxu1 %v2824_v33  ;;  %v933_v62 = vand.u32 4294901760, %v932_v46  ;;  %v975_v35 = vand.u32 4294901760, %v974_v0 }
 0x16d   :  { %2214 = vmatprep.subr.bf16.mxu1 %v2430_v1  ;;  %v953_v48 = vsub.f32 %v2846_v27, %v3076_v42  ;;  %v2311_v9 = vpack.c.bf16 %v3085_v2, %v3084_v63  ;;  %v2314_v20 = vpack.c.bf16 %v3087_v37, %v3086_v10 }
 0x16e   :  { %v2233_v55 = vpack.c.bf16 %v933_v62, %v926_v47  ;;  %v2242_v46 = vpack.c.bf16 %v975_v35, %v968_v15  ;;  %v2245_v47 = vpack.c.bf16 %v2696_v28, %v2694_v23  ;;  %v2248_v62 = vpack.c.bf16 %v2700_v30, %v2698_v38 }
 0x16f   :  { %v954_v24 = vand.u32 4294901760, %v953_v48  ;;  %v2263_v48 = vpack.c.bf16 %v2848_v36, %v2846_v27  ;;  %v2299_v23 = vpack.c.bf16 %v903_v12, %v896_v3  ;;  %v2302_v28 = vpack.c.bf16 %v917_v53, %v910_v41 }
 0x170   :  { %2216 = vmatpush3.bf16.msra.mxu1 %v2844_v17  ;;  %v2305_v38 = vpack.c.bf16 %v931_v25, %v924_v16  ;;  %v2308_v30 = vpack.c.bf16 %v945_v32, %v938_v31 }
 0x171   :  { %2217 = vmatprep.subr.bf16.mxu1 %v2430_v1  ;;  %v2239_v58 = vpack.c.bf16 %v961_v29, %v954_v24  ;;  %v1426_v24 = vld [vmem:[%s3062_s4] ss:$0 sm:$0xff] }
 0x174   :  { %2219 = vmatpush3.bf16.msra.mxu1 %v2856_v56 }
 0x175   :  { %2220 = vmatprep.subr.bf16.mxu1 %v2430_v1 }
 0x23a   :  { %v746_v29 = vpop.f32.mrb[0].mxu0 }
 0x23b   :  { %v2340_v61 = vadd.f32 %v1426_v24, %v746_v29  ;;  %v1841_v0 = vpop.f32.mrb[1].mxu0 }
 0x23d   :  { %2375 = vtanh.f32 %v2340_v61 }
 0x247   :  { %v2376_v15 = vpop.eup %2375 }
 0x248   :  { %v2947_v35 = vand.u32 4294901760, %v2376_v15 }
 0x24a   :  { %v856_v51 = vsub.f32 %v2376_v15, %v2947_v35 }
 0x24c   :  { %v857_v34 = vand.u32 4294901760, %v856_v51 }
 0x24e   :  { %v858_v45 = vsub.f32 %v856_v51, %v857_v34 }
 0x250   :  { %v859_v42 = vand.u32 4294901760, %v858_v45 }
 0x252   :  { %1875 = vmatmul.mubr.f32.vlgmr.msra.gmra.mrb[0].mxu1 %v859_v42 }
 0x253   :  { %2222 = vmatpush3.bf16.msra.mxu1 %v2870_v44  ;;  %1909 = vmatprep.mubr.msk.f32.mxu1 %vm2432_vm0, %v2433_v59  ;;  %v2293_v44 = vpack.c.bf16 %v875_v7, %v868_v6 }
 0x254   :  { %2223 = vmatprep.subr.bf16.mxu1 %v2430_v1 }
 0x257   :  { %2225 = vmatpush3.bf16.msra.mxu1 %v2880_v19  ;;  %v2296_v19 = vpack.c.bf16 %v889_v57, %v882_v43 }
 0x258   :  { %2226 = vmatprep.subr.bf16.mxu1 %v2430_v1 }
 0x25b   :  { %2228 = vmatpush3.bf16.msra.mxu1 %v2227_v54 }
 0x25c   :  { %2229 = vmatprep.subr.bf16.mxu1 %v2430_v1 }
 0x25f   :  { %2231 = vmatpush3.bf16.msra.mxu1 %v2230_v26 }
 0x260   :  { %2232 = vmatprep.subr.bf16.mxu1 %v2430_v1 }
 0x263   :  { %2234 = vmatpush3.bf16.msra.mxu1 %v2233_v55 }
 0x264   :  { %2235 = vmatprep.subr.bf16.mxu1 %v2430_v1 }
 0x267   :  { %2237 = vmatpush3.bf16.msra.mxu1 %v2236_v60 }
 0x268   :  { %2238 = vmatprep.subr.bf16.mxu1 %v2430_v1 }
 0x26b   :  { %2240 = vmatpush3.bf16.msra.mxu1 %v2239_v58 }
 0x26c   :  { %2241 = vmatprep.subr.bf16.mxu1 %v2430_v1 }
 0x26f   :  { %2243 = vmatpush3.bf16.msra.mxu1 %v2242_v46 }
 0x270   :  { %2244 = vmatprep.subr.bf16.mxu1 %v2430_v1 }
 0x272   :  { %1910 = vmatmul.mubr.f32.vlgmr.msra.gmra.mrb[0].mxu1 %v2947_v35 }
 0x273   :  { %2246 = vmatpush3.bf16.msra.mxu1 %v2245_v47  ;;  %1944 = vmatprep.mubr.msk.f32.mxu1 %vm2432_vm0, %v2433_v59 }
 0x274   :  { %2247 = vmatprep.subr.bf16.mxu1 %v2430_v1 }
 0x277   :  { %2249 = vmatpush3.bf16.msra.mxu1 %v2248_v62 }
 0x278   :  { %2250 = vmatprep.subr.bf16.mxu1 %v2430_v1 }
 0x27b   :  { %2252 = vmatpush3.bf16.msra.mxu1 %v2251_v5 }
 0x27c   :  { %2253 = vmatprep.subr.bf16.mxu1 %v2430_v1 }
 0x27f   :  { %2255 = vmatpush3.bf16.msra.mxu1 %v2254_v13 }
 0x280   :  { %2256 = vmatprep.subr.bf16.mxu1 %v2430_v1 }
 0x283   :  { %2258 = vmatpush3.bf16.msra.mxu1 %v2257_v14 }
 0x284   :  { %2259 = vmatprep.subr.bf16.mxu1 %v2430_v1 }
 0x287   :  { %2261 = vmatpush3.bf16.msra.mxu1 %v2260_v18 }
 0x288   :  { %2262 = vmatprep.subr.bf16.mxu1 %v2430_v1 }
 0x28b   :  { %2264 = vmatpush3.bf16.msra.mxu1 %v2263_v48 }
 0x28c   :  { %2265 = vmatprep.subr.bf16.mxu1 %v2430_v1 }
 0x28f   :  { %2267 = vmatpush3.bf16.msra.mxu1 %v2266_v49 }
 0x290   :  { %2268 = vmatprep.subr.bf16.mxu1 %v2430_v1 }
 0x292   :  { %1945 = vmatmul.mubr.f32.vlgmr.msra.gmra.mrb[0].mxu1 %v856_v51 }
 0x293   :  { %2270 = vmatpush3.bf16.msra.mxu1 %v2692_v22  ;;  %1979 = vmatprep.mubr.msk.f32.mxu1 %vm2432_vm0, %v2433_v59 }
 0x294   :  { %2271 = vmatprep.subr.bf16.mxu1 %v2430_v1 }
 0x297   :  { %2273 = vmatpush3.bf16.msra.mxu1 %v2703_v39 }
 0x298   :  { %2274 = vmatprep.subr.bf16.mxu1 %v2430_v1 }
 0x29b   :  { %2276 = vmatpush3.bf16.msra.mxu1 %v2812_v50 }
 0x29c   :  { %2277 = vmatprep.subr.bf16.mxu1 %v2430_v1 }
 0x29f   :  { %2279 = vmatpush3.bf16.msra.mxu1 %v2816_v52 }
 0x2a0   :  { %2280 = vmatprep.subr.bf16.mxu1 %v2430_v1 }
 0x2a3   :  { %2282 = vmatpush3.bf16.msra.mxu1 %v2820_v4 }
 0x2a4   :  { %2283 = vmatprep.subr.bf16.mxu1 %v2430_v1 }
 0x2a7   :  { %2285 = vmatpush3.bf16.msra.mxu1 %v2824_v33 }
 0x2a8   :  { %2286 = vmatprep.subr.bf16.mxu1 %v2430_v1 }
 0x2ab   :  { %2288 = vmatpush3.bf16.msra.mxu1 %v2844_v17 }
 0x2ac   :  { %2289 = vmatprep.subr.bf16.mxu1 %v2430_v1 }
 0x2af   :  { %2291 = vmatpush3.bf16.msra.mxu1 %v2856_v56 }
 0x2b0   :  { %2292 = vmatprep.subr.bf16.mxu1 %v2430_v1 }
 0x2b2   :  { %1980 = vmatmul.mubr.f32.vlgmr.msra.gmra.mrb[0].mxu1 %v857_v34 }
 0x2b3   :  { %2294 = vmatpush3.bf16.msra.mxu1 %v2293_v44  ;;  %2014 = vmatprep.mubr.msk.f32.mxu1 %vm2432_vm0, %v2433_v59 }
 0x2b4   :  { %2295 = vmatprep.subr.bf16.mxu1 %v2430_v1 }
 0x2b7   :  { %2297 = vmatpush3.bf16.msra.mxu1 %v2296_v19 }
 0x2b8   :  { %2298 = vmatprep.subr.bf16.mxu1 %v2430_v1 }
 0x2bb   :  { %2300 = vmatpush3.bf16.msra.mxu1 %v2299_v23 }
 0x2bc   :  { %2301 = vmatprep.subr.bf16.mxu1 %v2430_v1 }
 0x2bf   :  { %2303 = vmatpush3.bf16.msra.mxu1 %v2302_v28 }
 0x2c0   :  { %2304 = vmatprep.subr.bf16.mxu1 %v2430_v1 }
 0x2c3   :  { %2306 = vmatpush3.bf16.msra.mxu1 %v2305_v38 }
 0x2c4   :  { %2307 = vmatprep.subr.bf16.mxu1 %v2430_v1 }
 0x2c7   :  { %2309 = vmatpush3.bf16.msra.mxu1 %v2308_v30 }
 0x2c8   :  { %2310 = vmatprep.subr.bf16.mxu1 %v2430_v1 }
 0x2cb   :  { %2312 = vmatpush3.bf16.msra.mxu1 %v2311_v9 }
 0x2cc   :  { %2313 = vmatprep.subr.bf16.mxu1 %v2430_v1 }
 0x2cf   :  { %2315 = vmatpush3.bf16.msra.mxu1 %v2314_v20 }
 0x2d0   :  { %2316 = vmatprep.subr.bf16.mxu1 %v2430_v1 }
 0x2d2   :  { %2015 = vmatmul.mubr.f32.vlgmr.msra.gmra.mrb[0].mxu1 %v2947_v35 }
 0x2d3   :  { %2318 = vmatpush3.bf16.msra.mxu1 %v2692_v22  ;;  %2049 = vmatprep.mubr.msk.f32.mxu1 %vm2432_vm0, %v2433_v59  ;;  %v1427_v59 = vld [vmem:[%s3064_s6] ss:$0 sm:$0xff] }
 0x2d4   :  { %2319 = vmatprep.subr.bf16.mxu1 %v2430_v1 }
 0x2d7   :  { %2321 = vmatpush3.bf16.msra.mxu1 %v2703_v39 }
 0x2d8   :  { %2322 = vmatprep.subr.bf16.mxu1 %v2430_v1 }
 0x2db   :  { %2324 = vmatpush3.bf16.msra.mxu1 %v2812_v50 }
 0x2dc   :  { %2325 = vmatprep.subr.bf16.mxu1 %v2430_v1 }
 0x2df   :  { %2327 = vmatpush3.bf16.msra.mxu1 %v2816_v52 }
 0x2e0   :  { %2328 = vmatprep.subr.bf16.mxu1 %v2430_v1 }
 0x2e3   :  { %2330 = vmatpush3.bf16.msra.mxu1 %v2820_v4 }
 0x2e4   :  { %2331 = vmatprep.subr.bf16.mxu1 %v2430_v1 }
 0x2e7   :  { %2333 = vmatpush3.bf16.msra.mxu1 %v2824_v33 }
 0x2e8   :  { %2334 = vmatprep.subr.bf16.mxu1 %v2430_v1 }
 0x2eb   :  { %2336 = vmatpush3.bf16.msra.mxu1 %v2844_v17 }
 0x2ec   :  { %2337 = vmatprep.subr.bf16.mxu1 %v2430_v1 }
 0x2ef   :  { %2339 = vmatpush3.bf16.msra.mxu1 %v2856_v56 }
 0x2f2   :  { %2050 = vmatmul.mubr.f32.vlgmr.msra.gmra.mrb[0].mxu1 %v2947_v35 }
 0x3c5   :  { %v1411_v22 = vpop.f32.mrb[0].mxu1 }
 0x3c6   :  { %v2341_v39 = vadd.f32 %v1427_v59, %v1411_v22  ;;  %v2051_v50 = vpop.f32.mrb[1].mxu1 }
 0x3c8   :  { %1416 = vst.msk [vmem:[%s3065_s7] sm:$0xff] %vm1415_vm1, %v2341_v39 }
 0x3c9   :  { %1421 = vsyncpa [#allocation3], 1 }
 0x3ca   :  { %1422 = vsyncpa [#allocation5], 1 }

</bundles_post_ra>
